<compile_context>
chip_gen: v7x
topology: tpu7x:2x2x1
jax: 0.10.0
libtpu: 0.0.40
codegen_flags: <defaults>
</compile_context>

<pallas_src>
import jax
import jax.numpy as jnp
from jax.experimental import pallas as pl
from jax.experimental.pallas import tpu as pltpu


N_BINS1, N_BINS2 = 131, 32
N_BINS = N_BINS1 + N_BINS2  # 163


def _rbf_kernel(x_ref, c_ref, a_ref, o_ref):
    # x_ref: (tm, 1)        input values (rows -> sublanes)
    # c_ref: (1, N_BINS)    centers                (grid-resident)
    # a_ref: (1, N_BINS)    coeff = -0.5 / sigma^2 (grid-resident)
    # o_ref: (tm, N_BINS)   output
    x = x_ref[...]                      # (tm, 1)
    c = c_ref[...]                      # (1, N_BINS)
    a = a_ref[...]                      # (1, N_BINS)
    diff = x - c                        # broadcast -> (tm, N_BINS)
    # One VPU mul-chain + one EUP exp per element; no runtime divide.
    o_ref[...] = jnp.exp(diff * diff * a).astype(o_ref.dtype)


def make_rbf_params(min1=0.0, max1=26.0, bins1=N_BINS1,
                    min2=27.0, max2=58.0, bins2=N_BINS2):
    centers1 = jnp.linspace(min1, max1, bins1)
    sigma1 = (max1 - min1) / (bins1 - 1)
    centers2 = jnp.linspace(min2, max2, bins2)
    sigma2 = (max2 - min2) / (bins2 - 1)
    centers = jnp.concatenate([centers1, centers2]).astype(jnp.float32)
    sigma = jnp.concatenate(
        [jnp.full((bins1,), sigma1), jnp.full((bins2,), sigma2)]
    ).astype(jnp.float32)
    return centers, sigma


def rbf_encode(x, centers, sigma, tm=2048, out_dtype=jnp.float32):
    """Pallas RBF encoder.  x: any shape -> output x.shape + (N_BINS,).

    tm: row tile (rows of flattened x per grid step).  2048 amortizes the
        per-step overhead while staying tiny in VMEM; it is clamped down for
        small inputs.  On v5e, tm beyond ~4096 may need vmem_limit_bytes.
    """
    orig_shape = x.shape
    x_flat = x.reshape(-1, 1).astype(jnp.float32)
    m = x_flat.shape[0]

    # Clamp the tile to (8-rounded) M so tiny inputs don't request a huge
    # block; keep it a multiple of 8 for the sublane constraint.
    tm = max(8, min(int(tm), ((m + 7) // 8) * 8))
    grid = (pl.cdiv(m, tm),)  # ragged last block is masked by Pallas

    c2d = centers.reshape(1, N_BINS).astype(jnp.float32)
    # Fold -0.5 and the divide into a single per-bin constant (done once,
    # outside the kernel): exp(-0.5*(d/s)^2) == exp(d*d * (-0.5/s^2)).
    a2d = (-0.5 / (sigma * sigma)).reshape(1, N_BINS).astype(jnp.float32)

    out = pl.pallas_call(
        _rbf_kernel,
        out_shape=jax.ShapeDtypeStruct((m, N_BINS), out_dtype),
        grid_spec=pltpu.PrefetchScalarGridSpec(
            num_scalar_prefetch=0,
            grid=grid,
            in_specs=[
                pl.BlockSpec((tm, 1), lambda i: (i, 0)),        # x rows
                pl.BlockSpec((1, N_BINS), lambda i: (0, 0)),    # centers (resident)
                pl.BlockSpec((1, N_BINS), lambda i: (0, 0)),    # coeff   (resident)
            ],
            out_specs=pl.BlockSpec((tm, N_BINS), lambda i: (i, 0)),
        ),
        compiler_params=pltpu.CompilerParams(
            dimension_semantics=("parallel",)
        ),
    )(x_flat, c2d, a2d)

    return out.reshape(*orig_shape, N_BINS)


if __name__ == "__main__":
    key = jax.random.PRNGKey(0)
    # J-coupling-like scalar values per atom pair: (batch=2, seq=8, seq=8)
    x = jax.random.uniform(key, (2, 8, 8), minval=0.0, maxval=58.0,
                           dtype=jnp.float32)

    centers, sigma = make_rbf_params()
    y = jax.block_until_ready(rbf_encode(x, centers, sigma))

    # Reference check in plain JAX (matches the PyTorch forward).
    ref = jnp.exp(-0.5 * ((x[..., None] - centers) / sigma) ** 2)
    assert y.shape == x.shape + (N_BINS,), y.shape
    assert jnp.allclose(y, ref, atol=1e-5, rtol=1e-5)

    # Non-tile-aligned M path (3*7*5 = 105 rows): exercises the ragged last
    # block — no pad/slice copies in the wrapper.
    x2 = jax.random.uniform(jax.random.PRNGKey(1), (3, 7, 5),
                            minval=0.0, maxval=58.0, dtype=jnp.float32)
    y2 = jax.block_until_ready(rbf_encode(x2, centers, sigma))
    ref2 = jnp.exp(-0.5 * ((x2[..., None] - centers) / sigma) ** 2)
    assert y2.shape == x2.shape + (N_BINS,), y2.shape
    assert jnp.allclose(y2, ref2, atol=1e-5, rtol=1e-5)

    print("KERNEL_OK")
</pallas_src>

<mosaic_0001>
module attributes {stable_mosaic.version = 11 : i64} {
  func.func @_rbf_kernel(%arg0: i32, %arg1: memref<128x1xf32, #tpu.memory_space<vmem>>, %arg2: memref<1x163xf32, #tpu.memory_space<vmem>>, %arg3: memref<1x163xf32, #tpu.memory_space<vmem>>, %arg4: memref<128x163xf32, #tpu.memory_space<vmem>>) attributes {dimension_semantics = [#tpu.dimension_semantics<parallel>], iteration_bounds = array<i64: 1>, scalar_prefetch = 0 : i64, scratch_operands = 0 : i64, tpu.core_type = #tpu.core_type<tc>, window_params = [{transform_indices = @transform_0, window_bounds = array<i64: 128, 1>}, {pipeline_mode = #tpu.pipeline_mode<synchronous>, transform_indices = @transform_1, window_bounds = array<i64: 1, 163>}, {pipeline_mode = #tpu.pipeline_mode<synchronous>, transform_indices = @transform_2, window_bounds = array<i64: 1, 163>}, {transform_indices = @transform_3, window_bounds = array<i64: 128, 163>}]} {
    %c0 = arith.constant 0 : index
    %c0_0 = arith.constant 0 : index
    %0 = vector.load %arg1[%c0, %c0_0] : memref<128x1xf32, #tpu.memory_space<vmem>>, vector<128x1xf32>
    %c0_1 = arith.constant 0 : index
    %c0_2 = arith.constant 0 : index
    %1 = vector.load %arg2[%c0_1, %c0_2] : memref<1x163xf32, #tpu.memory_space<vmem>>, vector<1x163xf32>
    %c0_3 = arith.constant 0 : index
    %c0_4 = arith.constant 0 : index
    %2 = vector.load %arg3[%c0_3, %c0_4] : memref<1x163xf32, #tpu.memory_space<vmem>>, vector<1x163xf32>
    %3 = vector.broadcast %0 : vector<128x1xf32> to vector<128x163xf32>
    %4 = vector.broadcast %1 : vector<1x163xf32> to vector<128x163xf32>
    %5 = arith.subf %3, %4 : vector<128x163xf32>
    %6 = arith.mulf %5, %5 : vector<128x163xf32>
    %7 = vector.broadcast %2 : vector<1x163xf32> to vector<128x163xf32>
    %8 = arith.mulf %6, %7 : vector<128x163xf32>
    %9 = math.exp %8 : vector<128x163xf32>
    %c0_5 = arith.constant 0 : index
    %c0_6 = arith.constant 0 : index
    %10 = vector.load %arg4[%c0_5, %c0_6] : memref<128x163xf32, #tpu.memory_space<vmem>>, vector<128x163xf32>
    tpu.vector_store %arg4[%c0_5, %c0_6], %9 {strides = array<i32>} : memref<128x163xf32, #tpu.memory_space<vmem>>, vector<128x163xf32>,
    return
  }
  func.func @transform_0(%arg0: i32) -> (i32, i32) {
    %c0_i32 = arith.constant 0 : i32
    %c0_i32_0 = arith.constant 0 : i32
    return %arg0, %c0_i32 : i32, i32
  }
  func.func @transform_1(%arg0: i32) -> (i32, i32) {
    %c0_i32 = arith.constant 0 : i32
    %c0_i32_0 = arith.constant 0 : i32
    %c0_i32_1 = arith.constant 0 : i32
    return %c0_i32, %c0_i32_0 : i32, i32
  }
  func.func @transform_2(%arg0: i32) -> (i32, i32) {
    %c0_i32 = arith.constant 0 : i32
    %c0_i32_0 = arith.constant 0 : i32
    %c0_i32_1 = arith.constant 0 : i32
    return %c0_i32, %c0_i32_0 : i32, i32
  }
  func.func @transform_3(%arg0: i32) -> (i32, i32) {
    %c0_i32 = arith.constant 0 : i32
    %c0_i32_0 = arith.constant 0 : i32
    return %arg0, %c0_i32 : i32, i32
  }
}

</mosaic_0001>

<bundles_post_ra>
// kernel: tpu_custom_call.1
= control target key start
LH: loop header
LB: loop body
LE: loop exit
PB: predicated region body
PF: predicated region fallthrough
CT: control target
= control target key end

     0   :  { %v398_v0 = vmov 0   ;;  %v113_v17 = vlaneseq  ;;  %vm295_vm0 = vcmask 285696   ;;  %s657_s0 = inlined_call_operand.vmem [shape: f32[128,1], index: 0, kind: input, shape index: {}]   ;;  %s658_s1 = inlined_call_operand.vmem [shape: f32[1,163], index: 1, kind: input, shape index: {}]   ;;  %s659_s2 = inlined_call_operand.vmem [shape: f32[1,163], index: 2, kind: input, shape index: {}]   ;;  %s660_s3 = inlined_call_operand.vmem [shape: f32[128,163], index: 3, kind: output, shape index: {}]  }
   0x1   :  { %333 = vset.pattern.permute.xlu1 %v398_v0  ;;  %332 = vset.pattern.permute.xlu0 %v398_v0  ;;  %v16_v1 = vld [vmem:[%s657_s0 + $0x10] sm:$0xff]  ;;  %v14_v2 = vld [vmem:[%s657_s0] sm:$0xff]  ;;  %v17_v3 = vld [vmem:[%s657_s0 + $0x18] sm:$0xff] }
   0x2   :  { %44 = vperm.xlu1 %333, %v16_v1   ;;  %34 = vperm.xlu0 %332, %v14_v2   ;;  %v15_v4 = vld [vmem:[%s657_s0 + $0x8] sm:$0xff]  ;;  %v18_v6 = vld [vmem:[%s657_s0 + $0x20] sm:$0xff]  ;;  %v21_v7 = vld [vmem:[%s657_s0 + $0x38] sm:$0xff]  ;;  %v114_v18 = vshrl.u32 %v113_v17, 7 }
   0x3   :  { %v19_v5 = vld [vmem:[%s657_s0 + $0x28] sm:$0xff]  ;;  %v20_v8 = vld [vmem:[%s657_s0 + $0x30] sm:$0xff]  ;;  %v22_v10 = vld [vmem:[%s657_s0 + $0x40] sm:$0xff] }
   0x4   :  { %v23_v9 = vld [vmem:[%s657_s0 + $0x48] sm:$0xff]  ;;  %v25_v11 = vld [vmem:[%s657_s0 + $0x58] sm:$0xff]  ;;  %v24_v12 = vld [vmem:[%s657_s0 + $0x50] sm:$0xff]  ;;  %v115_v19 = vsub.s32 0, %v114_v18  ;;  %v119_v20 = vsub.s32 1, %v114_v18 }
   0x5   :  { %v27_v13 = vld [vmem:[%s657_s0 + $0x68] sm:$0xff]  ;;  %v26_v14 = vld [vmem:[%s657_s0 + $0x60] sm:$0xff]  ;;  %v29_v15 = vld [vmem:[%s657_s0 + $0x78] sm:$0xff] }
   0x6   :  { %49 = vperm.xlu1 %333, %v17_v3   ;;  %39 = vperm.xlu0 %332, %v15_v4   ;;  %v28_v16 = vld [vmem:[%s657_s0 + $0x70] sm:$0xff]  ;;  %v30_v21 = vld [vmem:[%s658_s1] sm:$0x3] }
   0x7   :  { %v31_v22 = vld [vmem:[%s659_s2] sm:$0x3]  ;;  %v473_v23 = vrot.slane %v30_v21, %v115_v19  ;;  %v475_v24 = vrot.slane %v30_v21, %v119_v20 }
   0x8   :  { %v477_v25 = vrot.slane %v31_v22, %v115_v19  ;;  %v479_v26 = vrot.slane %v31_v22, %v119_v20 }
   0xa   :  { %59 = vperm.xlu1 %333, %v19_v5   ;;  %54 = vperm.xlu0 %332, %v18_v6  }
   0xe   :  { %69 = vperm.xlu1 %333, %v21_v7   ;;  %64 = vperm.xlu0 %332, %v20_v8  }
  0x12   :  { %79 = vperm.xlu1 %333, %v23_v9   ;;  %74 = vperm.xlu0 %332, %v22_v10  }
  0x16   :  { %89 = vperm.xlu1 %333, %v25_v11   ;;  %84 = vperm.xlu0 %332, %v24_v12  }
  0x1a   :  { %99 = vperm.xlu1 %333, %v27_v13   ;;  %94 = vperm.xlu0 %332, %v26_v14  }
  0x1e   :  { %109 = vperm.xlu1 %333, %v29_v15   ;;  %104 = vperm.xlu0 %332, %v28_v16  }
  0x81   :  { %v45_v27 = vpop.permute.xlu1 %44  ;;  %v35_v28 = vpop.permute.xlu0 %34 }
  0x82   :  { %v127_v29 = vsub.f32 %v45_v27, %v473_v23  ;;  %v128_v30 = vsub.f32 %v45_v27, %v475_v24  ;;  %v123_v31 = vsub.f32 %v35_v28, %v473_v23  ;;  %v124_v32 = vsub.f32 %v35_v28, %v475_v24 }
  0x84   :  { %v159_v33 = vmul.f32 %v127_v29, %v127_v29  ;;  %v160_v34 = vmul.f32 %v128_v30, %v128_v30  ;;  %v155_v35 = vmul.f32 %v123_v31, %v123_v31  ;;  %v156_v36 = vmul.f32 %v124_v32, %v124_v32 }
  0x85   :  { %v50_v37 = vpop.permute.xlu1 %49  ;;  %v40_v38 = vpop.permute.xlu0 %39 }
  0x86   :  { %v202_v39 = vmul.f32 %v477_v25, %v159_v33  ;;  %v203_v40 = vmul.f32 %v479_v26, %v160_v34  ;;  %v198_v41 = vmul.f32 %v477_v25, %v155_v35  ;;  %v199_v42 = vmul.f32 %v479_v26, %v156_v36 }
  0x87   :  { %v129_v43 = vsub.f32 %v50_v37, %v473_v23  ;;  %v130_v44 = vsub.f32 %v50_v37, %v475_v24  ;;  %v125_v45 = vsub.f32 %v40_v38, %v473_v23  ;;  %v126_v46 = vsub.f32 %v40_v38, %v475_v24 }
  0x88   :  { %v238_v47 = vmul.f32 1.442695, %v202_v39  ;;  %v240_v48 = vmul.f32 1.442695, %v203_v40  ;;  %v230_v49 = vmul.f32 1.442695, %v198_v41 }
  0x89   :  { %v232_v50 = vmul.f32 1.442695, %v199_v42  ;;  %v161_v51 = vmul.f32 %v129_v43, %v129_v43  ;;  %v162_v52 = vmul.f32 %v130_v44, %v130_v44  ;;  %v157_v53 = vmul.f32 %v125_v45, %v125_v45  ;;  %v60_v54 = vpop.permute.xlu1 %59  ;;  %v55_v55 = vpop.permute.xlu0 %54 }
  0x8a   :  { %334 = vpow2.f32 %v238_v47  ;;  %v158_v56 = vmul.f32 %v126_v46, %v126_v46  ;;  %v133_v57 = vsub.f32 %v60_v54, %v473_v23  ;;  %v134_v58 = vsub.f32 %v60_v54, %v475_v24 }
  0x8b   :  { %336 = vpow2.f32 %v240_v48  ;;  %v204_v59 = vmul.f32 %v477_v25, %v161_v51  ;;  %v205_v60 = vmul.f32 %v479_v26, %v162_v52  ;;  %v200_v61 = vmul.f32 %v477_v25, %v157_v53 }
  0x8c   :  { %338 = vpow2.f32 %v230_v49  ;;  %v201_v62 = vmul.f32 %v479_v26, %v158_v56  ;;  %v165_v63 = vmul.f32 %v133_v57, %v133_v57  ;;  %v166_v0 = vmul.f32 %v134_v58, %v134_v58 }
  0x8d   :  { %340 = vpow2.f32 %v232_v50  ;;  %v242_v1 = vmul.f32 1.442695, %v204_v59  ;;  %v244_v2 = vmul.f32 1.442695, %v205_v60  ;;  %v234_v3 = vmul.f32 1.442695, %v200_v61  ;;  %v70_v4 = vpop.permute.xlu1 %69  ;;  %v65_v5 = vpop.permute.xlu0 %64 }
  0x8e   :  { %v236_v6 = vmul.f32 1.442695, %v201_v62  ;;  %v208_v7 = vmul.f32 %v477_v25, %v165_v63  ;;  %v209_v8 = vmul.f32 %v479_v26, %v166_v0  ;;  %v131_v9 = vsub.f32 %v55_v55, %v473_v23 }
  0x8f   :  { %342 = vpow2.f32 %v242_v1  ;;  %v132_v10 = vsub.f32 %v55_v55, %v475_v24  ;;  %v137_v11 = vsub.f32 %v70_v4, %v473_v23  ;;  %v138_v12 = vsub.f32 %v70_v4, %v475_v24 }
  0x90   :  { %344 = vpow2.f32 %v244_v2  ;;  %v250_v13 = vmul.f32 1.442695, %v208_v7  ;;  %v252_v14 = vmul.f32 1.442695, %v209_v8  ;;  %v163_v15 = vmul.f32 %v131_v9, %v131_v9 }
  0x91   :  { %346 = vpow2.f32 %v234_v3  ;;  %v164_v16 = vmul.f32 %v132_v10, %v132_v10  ;;  %v169_v17 = vmul.f32 %v137_v11, %v137_v11  ;;  %v170_v18 = vmul.f32 %v138_v12, %v138_v12  ;;  %v80_v19 = vpop.permute.xlu1 %79  ;;  %v75_v20 = vpop.permute.xlu0 %74 }
  0x92   :  { %348 = vpow2.f32 %v236_v6  ;;  %v206_v21 = vmul.f32 %v477_v25, %v163_v15  ;;  %v135_v22 = vsub.f32 %v65_v5, %v473_v23  ;;  %v136_v27 = vsub.f32 %v65_v5, %v475_v24 }
  0x93   :  { %350 = vpow2.f32 %v250_v13  ;;  %v207_v28 = vmul.f32 %v479_v26, %v164_v16  ;;  %v212_v29 = vmul.f32 %v477_v25, %v169_v17  ;;  %v213_v30 = vmul.f32 %v479_v26, %v170_v18 }
  0x94   :  { %v335_v31 = vpop.eup %334  ;;  %352 = vpow2.f32 %v252_v14  ;;  %v246_v32 = vmul.f32 1.442695, %v206_v21  ;;  %v167_v33 = vmul.f32 %v135_v22, %v135_v22  ;;  %v168_v34 = vmul.f32 %v136_v27, %v136_v27 }
  0x95   :  { %v337_v35 = vpop.eup %336  ;;  %299 = vst [vmem:[%s660_s3 + $0x20] sm:$0xff] %v335_v31  ;;  %v248_v36 = vmul.f32 1.442695, %v207_v28  ;;  %v258_v37 = vmul.f32 1.442695, %v212_v29  ;;  %v141_v39 = vsub.f32 %v80_v19, %v473_v23  ;;  %v90_v40 = vpop.permute.xlu1 %89  ;;  %v142_v44 = vsub.f32 %v80_v19, %v475_v24 }
  0x96   :  { %v260_v38 = vmul.f32 1.442695, %v213_v30  ;;  %v339_v41 = vpop.eup %338  ;;  %300 = vst.msk [vmem:[%s660_s3 + $0x28] sm:$0xff] %vm295_vm0, %v337_v35  ;;  %354 = vpow2.f32 %v246_v32  ;;  %v210_v42 = vmul.f32 %v477_v25, %v167_v33  ;;  %v211_v43 = vmul.f32 %v479_v26, %v168_v34  ;;  %v85_v49 = vpop.permute.xlu0 %84 }
  0x97   :  { %v341_v45 = vpop.eup %340  ;;  %294 = vst [vmem:[%s660_s3] sm:$0xff] %v339_v41  ;;  %356 = vpow2.f32 %v248_v36  ;;  %v173_v46 = vmul.f32 %v141_v39, %v141_v39  ;;  %v139_v47 = vsub.f32 %v75_v20, %v473_v23  ;;  %v140_v48 = vsub.f32 %v75_v20, %v475_v24 }
  0x98   :  { %296 = vst.msk [vmem:[%s660_s3 + $0x8] sm:$0xff] %vm295_vm0, %v341_v45  ;;  %358 = vpow2.f32 %v258_v37  ;;  %v254_v50 = vmul.f32 1.442695, %v210_v42  ;;  %v256_v51 = vmul.f32 1.442695, %v211_v43  ;;  %v174_v52 = vmul.f32 %v142_v44, %v142_v44 }
  0x99   :  { %v343_v53 = vpop.eup %342  ;;  %360 = vpow2.f32 %v260_v38  ;;  %v216_v54 = vmul.f32 %v477_v25, %v173_v46  ;;  %v171_v55 = vmul.f32 %v139_v47, %v139_v47  ;;  %v172_v56 = vmul.f32 %v140_v48, %v140_v48  ;;  %v100_v57 = vpop.permute.xlu1 %99 }
  0x9a   :  { %v345_v58 = vpop.eup %344  ;;  %301 = vst [vmem:[%s660_s3 + $0x30] sm:$0xff] %v343_v53  ;;  %362 = vpow2.f32 %v254_v50  ;;  %v217_v59 = vmul.f32 %v479_v26, %v174_v52  ;;  %v145_v60 = vsub.f32 %v90_v40, %v473_v23  ;;  %v146_v61 = vsub.f32 %v90_v40, %v475_v24  ;;  %v95_v11 = vpop.permute.xlu0 %94 }
  0x9b   :  { %v347_v62 = vpop.eup %346  ;;  %302 = vst.msk [vmem:[%s660_s3 + $0x38] sm:$0xff] %vm295_vm0, %v345_v58  ;;  %364 = vpow2.f32 %v256_v51  ;;  %v266_v63 = vmul.f32 1.442695, %v216_v54  ;;  %v214_v0 = vmul.f32 %v477_v25, %v171_v55  ;;  %v215_v1 = vmul.f32 %v479_v26, %v172_v56 }
  0x9c   :  { %v349_v2 = vpop.eup %348  ;;  %297 = vst [vmem:[%s660_s3 + $0x10] sm:$0xff] %v347_v62  ;;  %v268_v3 = vmul.f32 1.442695, %v217_v59  ;;  %v177_v4 = vmul.f32 %v145_v60, %v145_v60  ;;  %v178_v5 = vmul.f32 %v146_v61, %v146_v61  ;;  %v143_v6 = vsub.f32 %v85_v49, %v473_v23 }
  0x9d   :  { %v351_v7 = vpop.eup %350  ;;  %298 = vst.msk [vmem:[%s660_s3 + $0x18] sm:$0xff] %vm295_vm0, %v349_v2  ;;  %366 = vpow2.f32 %v266_v63  ;;  %v262_v8 = vmul.f32 1.442695, %v214_v0  ;;  %v264_v9 = vmul.f32 1.442695, %v215_v1  ;;  %v144_v10 = vsub.f32 %v85_v49, %v475_v24  ;;  %v110_v19 = vpop.permute.xlu1 %109 }
  0x9e   :  { %v353_v12 = vpop.eup %352  ;;  %305 = vst [vmem:[%s660_s3 + $0x50] sm:$0xff] %v351_v7  ;;  %368 = vpow2.f32 %v268_v3  ;;  %v220_v13 = vmul.f32 %v477_v25, %v177_v4  ;;  %v221_v14 = vmul.f32 %v479_v26, %v178_v5  ;;  %v175_v15 = vmul.f32 %v143_v6, %v143_v6  ;;  %v105_v41 = vpop.permute.xlu0 %104 }
  0x9f   :  { %306 = vst.msk [vmem:[%s660_s3 + $0x58] sm:$0xff] %vm295_vm0, %v353_v12  ;;  %370 = vpow2.f32 %v262_v8  ;;  %v176_v16 = vmul.f32 %v144_v10, %v144_v10  ;;  %v149_v17 = vsub.f32 %v100_v57, %v473_v23  ;;  %v150_v18 = vsub.f32 %v100_v57, %v475_v24 }
  0xa0   :  { %v355_v20 = vpop.eup %354  ;;  %372 = vpow2.f32 %v264_v9  ;;  %v274_v21 = vmul.f32 1.442695, %v220_v13  ;;  %v276_v22 = vmul.f32 1.442695, %v221_v14  ;;  %v218_v27 = vmul.f32 %v477_v25, %v175_v15 }
  0xa1   :  { %v357_v28 = vpop.eup %356  ;;  %303 = vst [vmem:[%s660_s3 + $0x40] sm:$0xff] %v355_v20  ;;  %v219_v29 = vmul.f32 %v479_v26, %v176_v16  ;;  %v181_v30 = vmul.f32 %v149_v17, %v149_v17  ;;  %v182_v31 = vmul.f32 %v150_v18, %v150_v18  ;;  %v147_v32 = vsub.f32 %v95_v11, %v473_v23 }
  0xa2   :  { %v359_v33 = vpop.eup %358  ;;  %304 = vst.msk [vmem:[%s660_s3 + $0x48] sm:$0xff] %vm295_vm0, %v357_v28  ;;  %374 = vpow2.f32 %v274_v21  ;;  %v270_v34 = vmul.f32 1.442695, %v218_v27  ;;  %v148_v35 = vsub.f32 %v95_v11, %v475_v24  ;;  %v153_v36 = vsub.f32 %v110_v19, %v473_v23 }
  0xa3   :  { %v361_v37 = vpop.eup %360  ;;  %309 = vst [vmem:[%s660_s3 + $0x70] sm:$0xff] %v359_v33  ;;  %376 = vpow2.f32 %v276_v22  ;;  %v272_v38 = vmul.f32 1.442695, %v219_v29  ;;  %v224_v39 = vmul.f32 %v477_v25, %v181_v30  ;;  %v225_v40 = vmul.f32 %v479_v26, %v182_v31 }
  0xa4   :  { %v363_v42 = vpop.eup %362  ;;  %310 = vst.msk [vmem:[%s660_s3 + $0x78] sm:$0xff] %vm295_vm0, %v361_v37  ;;  %378 = vpow2.f32 %v270_v34  ;;  %v179_v43 = vmul.f32 %v147_v32, %v147_v32  ;;  %v180_v44 = vmul.f32 %v148_v35, %v148_v35  ;;  %v154_v45 = vsub.f32 %v110_v19, %v475_v24 }
  0xa5   :  { %v365_v46 = vpop.eup %364  ;;  %307 = vst [vmem:[%s660_s3 + $0x60] sm:$0xff] %v363_v42  ;;  %380 = vpow2.f32 %v272_v38  ;;  %v282_v47 = vmul.f32 1.442695, %v224_v39  ;;  %v284_v48 = vmul.f32 1.442695, %v225_v40  ;;  %v185_v49 = vmul.f32 %v153_v36, %v153_v36 }
  0xa6   :  { %308 = vst.msk [vmem:[%s660_s3 + $0x68] sm:$0xff] %vm295_vm0, %v365_v46  ;;  %v222_v50 = vmul.f32 %v477_v25, %v179_v43  ;;  %v223_v51 = vmul.f32 %v479_v26, %v180_v44  ;;  %v186_v52 = vmul.f32 %v154_v45, %v154_v45  ;;  %v151_v53 = vsub.f32 %v105_v41, %v473_v23 }
  0xa7   :  { %v367_v54 = vpop.eup %366  ;;  %382 = vpow2.f32 %v282_v47  ;;  %v228_v55 = vmul.f32 %v477_v25, %v185_v49  ;;  %v152_v56 = vsub.f32 %v105_v41, %v475_v24 }
  0xa8   :  { %v369_v57 = vpop.eup %368  ;;  %313 = vst [vmem:[%s660_s3 + $0x90] sm:$0xff] %v367_v54  ;;  %384 = vpow2.f32 %v284_v48  ;;  %v278_v58 = vmul.f32 1.442695, %v222_v50  ;;  %v280_v59 = vmul.f32 1.442695, %v223_v51  ;;  %v229_v60 = vmul.f32 %v479_v26, %v186_v52 }
  0xa9   :  { %v371_v61 = vpop.eup %370  ;;  %314 = vst.msk [vmem:[%s660_s3 + $0x98] sm:$0xff] %vm295_vm0, %v369_v57  ;;  %v290_v23 = vmul.f32 1.442695, %v228_v55  ;;  %v183_v62 = vmul.f32 %v151_v53, %v151_v53  ;;  %v184_v63 = vmul.f32 %v152_v56, %v152_v56 }
  0xaa   :  { %v373_v24 = vpop.eup %372  ;;  %311 = vst [vmem:[%s660_s3 + $0x80] sm:$0xff] %v371_v61  ;;  %386 = vpow2.f32 %v278_v58  ;;  %v292_v0 = vmul.f32 1.442695, %v229_v60 }
  0xab   :  { %312 = vst.msk [vmem:[%s660_s3 + $0x88] sm:$0xff] %vm295_vm0, %v373_v24  ;;  %388 = vpow2.f32 %v280_v59  ;;  %v226_v1 = vmul.f32 %v477_v25, %v183_v62  ;;  %v227_v2 = vmul.f32 %v479_v26, %v184_v63 }
  0xac   :  { %v375_v3 = vpop.eup %374  ;;  %390 = vpow2.f32 %v290_v23 }
  0xad   :  { %v377_v4 = vpop.eup %376  ;;  %317 = vst [vmem:[%s660_s3 + $0xb0] sm:$0xff] %v375_v3  ;;  %392 = vpow2.f32 %v292_v0  ;;  %v286_v5 = vmul.f32 1.442695, %v226_v1  ;;  %v288_v6 = vmul.f32 1.442695, %v227_v2 }
  0xae   :  { %v379_v7 = vpop.eup %378  ;;  %318 = vst.msk [vmem:[%s660_s3 + $0xb8] sm:$0xff] %vm295_vm0, %v377_v4 }
  0xaf   :  { %v381_v8 = vpop.eup %380  ;;  %315 = vst [vmem:[%s660_s3 + $0xa0] sm:$0xff] %v379_v7  ;;  %394 = vpow2.f32 %v286_v5 }
  0xb0   :  { %316 = vst.msk [vmem:[%s660_s3 + $0xa8] sm:$0xff] %vm295_vm0, %v381_v8  ;;  %396 = vpow2.f32 %v288_v6 }
  0xb1   :  { %v383_v25 = vpop.eup %382 }
  0xb2   :  { %v385_v26 = vpop.eup %384  ;;  %321 = vst [vmem:[%s660_s3 + $0xd0] sm:$0xff] %v383_v25 }
  0xb3   :  { %322 = vst.msk [vmem:[%s660_s3 + $0xd8] sm:$0xff] %vm295_vm0, %v385_v26 }
  0xb4   :  { %v387_v9 = vpop.eup %386 }
  0xb5   :  { %v389_v10 = vpop.eup %388  ;;  %319 = vst [vmem:[%s660_s3 + $0xc0] sm:$0xff] %v387_v9 }
  0xb6   :  { %v391_v11 = vpop.eup %390  ;;  %320 = vst.msk [vmem:[%s660_s3 + $0xc8] sm:$0xff] %vm295_vm0, %v389_v10 }
  0xb7   :  { %v393_v12 = vpop.eup %392  ;;  %325 = vst [vmem:[%s660_s3 + $0xf0] sm:$0xff] %v391_v11 }
  0xb8   :  { %326 = vst.msk [vmem:[%s660_s3 + $0xf8] sm:$0xff] %vm295_vm0, %v393_v12 }
  0xb9   :  { %v395_v13 = vpop.eup %394 }
  0xba   :  { %v397_v14 = vpop.eup %396  ;;  %323 = vst [vmem:[%s660_s3 + $0xe0] sm:$0xff] %v395_v13 }
  0xbb   :  { %324 = vst.msk [vmem:[%s660_s3 + $0xe8] sm:$0xff] %vm295_vm0, %v397_v14 }

</bundles_post_ra>
